<compile_context>
chip_gen: v7x
topology: tpu7x:2x2x1
jax: 0.10.0
libtpu: 0.0.40
codegen_flags: <defaults>
</compile_context>

<pallas_src>
import math
import jax
import jax.numpy as jnp
from jax.experimental import pallas as pl
from jax.experimental.pallas import tpu as pltpu

# ----- small shapes consistent with the module -----
B = 2            # batch
NVARS = 4        # args.nvars
SAMPLE_LEN = 32  # args.sample_len
PATCH_LEN = 8    # args.patch_len
STRIDE = 4       # args.shapelet_stride (== patch_stride)
PATCH_NUM = math.floor((SAMPLE_LEN - PATCH_LEN) / STRIDE) + 1   # unfold -> 7
P_PAD = 8        # patches per bag padded to the 8-sublane boundary
PATCH_DIM = 32   # patch_dim (W_P output)
D_MODEL = 32     # FCN feature-extractor output channels
N_CLASSES = 4    # args.nbins (pool output classes)
KSIZE = 3        # FCN conv kernel size
FEAT = NVARS * PATCH_LEN  # flattened patch features fed to W_P
HEADW = 8        # padded fused head width: [attn | ones | C classes | zero pad]


def millet_kernel(xw_ref, w_eff_ref, bias_ref, w_head_ref, b_head_ref,
                  sel_ref, b_cls_ref, out_ref):
    """Whole (padded) batch in one invocation; three tiny MXU pushes, no layout ops.

    xw_ref    : (BP, 3F)   host-built slab [x_prev | x | x_next], bag-padded to 8 rows
    w_eff_ref : (3F, D)    [W_P@W_conv[0]; W_P@W_conv[1]; W_P@W_conv[2]]
    bias_ref  : (BP, D)    conv(b_P + W_pos) + b_conv, pre-tiled per bag, 0 on pad rows
    w_head_ref: (D, 8)     col0 = w_attn, col1 = 0, cols2..5 = W_cls, rest 0
    b_head_ref: (1, 8)     col1 = 1 (denominator "ones" column), rest 0
    sel_ref   : (nb, BP)   bag-indicator (1 on valid rows of bag b, 0 elsewhere/pad)
    b_cls_ref : (1, C)     classifier bias, folded once into the bag output
    out_ref   : (nb, C)    bag_out
    """
    n_cls = out_ref.shape[1]

    # Fused patch-embedding + Conv1d(k=3, pad=1): one K=96 MXU pass.
    h = jnp.dot(xw_ref[...], w_eff_ref[...],
                preferred_element_type=jnp.float32) + bias_ref[...]
    h = jnp.maximum(h, 0.0)                                        # ReLU, (BP, D)

    # Fused attention-scorer + "ones" column + instance classifier head.
    s = jnp.dot(h, w_head_ref[...],
                preferred_element_type=jnp.float32) + b_head_ref[...]   # (BP, 8)

    # Attention softmax numerator, global-max shift (exact per bag: softmax is
    # shift-invariant; pad rows are zeroed by `sel` so they never contribute).
    a = s[:, 0:1]                                                  # (BP, 1)
    e = jnp.exp(a - jnp.max(a, axis=0, keepdims=True))             # (BP, 1), EUP

    # Segment reduction as one tiny MXU op: col1 -> sum(e) per bag (denominator),
    # cols 2..C+1 -> sum(e * inst) per bag (numerators).
    y = jnp.dot(sel_ref[...], e * s, preferred_element_type=jnp.float32)   # (nb, 8)
    den = y[:, 1:2]
    num = y[:, 2:2 + n_cls]
    out_ref[...] = num * pl.reciprocal(den, approx=True) + b_cls_ref[...]


def init_params(key):
    ks = jax.random.split(key, 8)
    return {
        "W_P":    jax.random.normal(ks[0], (FEAT, PATCH_DIM), jnp.float32) * 0.1,
        "b_P":    jnp.zeros((1, PATCH_DIM), jnp.float32),
        # pe='zeros', learn_pe=True -> small uniform init (PatchTST-style)
        "W_pos":  jax.random.uniform(ks[1], (PATCH_NUM, PATCH_DIM), jnp.float32,
                                     minval=-0.02, maxval=0.02),
        "W_conv": jax.random.normal(ks[2], (KSIZE, PATCH_DIM, D_MODEL), jnp.float32) * 0.1,
        "b_conv": jnp.zeros((1, D_MODEL), jnp.float32),
        "w_attn": jax.random.normal(ks[3], (D_MODEL, 1), jnp.float32) * 0.1,
        "W_cls":  jax.random.normal(ks[4], (D_MODEL, N_CLASSES), jnp.float32) * 0.1,
        "b_cls":  jnp.zeros((1, N_CLASSES), jnp.float32),
    }


def prepare_folded(params, nb):
    """Model-load-time folding (hoisted OUT of the per-call jit path).

    Exact algebraic folding of all linear stages before the ReLU, head fusion,
    per-bag bias tiling (padded to 8 rows) and the bag-indicator matrix.
    Valid only for the default config (dropout=0, scale=0).
    """
    # W_eff[k] = W_P @ W_conv[k], stacked row-wise in tap order (k=0 -> x[p-1]).
    w_eff = jnp.concatenate(
        [params["W_P"] @ params["W_conv"][k] for k in range(KSIZE)], axis=0)   # (3F, D)

    # bias_h[p] = b_conv + sum_k (b_P + W_pos)[p+k-1] @ W_conv[k]  (zero-padded edges)
    pos_b = params["b_P"] + params["W_pos"]                                    # (P, patch_dim)
    pos_pad = jnp.pad(pos_b, ((1, 1), (0, 0)))
    bias_h = params["b_conv"]
    for k in range(KSIZE):
        bias_h = bias_h + pos_pad[k:k + PATCH_NUM] @ params["W_conv"][k]       # (P, D)
    bias_h = jnp.pad(bias_h, ((0, P_PAD - PATCH_NUM), (0, 0)))                 # pad row -> 0
    bias_full = jnp.tile(bias_h, (nb, 1))                                      # (BP, D)

    # Fused, lane-padded head: [w_attn | ones-col(via bias) | W_cls | 0].
    w_head = jnp.zeros((D_MODEL, HEADW), jnp.float32)
    w_head = w_head.at[:, 0:1].set(params["w_attn"])
    w_head = w_head.at[:, 2:2 + N_CLASSES].set(params["W_cls"])
    b_head = jnp.zeros((1, HEADW), jnp.float32).at[0, 1].set(1.0)

    # Bag-indicator matrix (zero on pad rows).
    rows = jnp.arange(nb * P_PAD)
    sel = ((rows // P_PAD)[None, :] == jnp.arange(nb)[:, None]) & \
          ((rows % P_PAD)[None, :] < PATCH_NUM)
    sel = sel.astype(jnp.float32)                                              # (nb, BP)

    return {
        "w_eff": w_eff, "bias": bias_full, "w_head": w_head, "b_head": b_head,
        "sel": sel, "b_cls": params["b_cls"],
    }


def preprocess(bags):
    """Glue: unfold + mean_norm + flatten, exactly mirroring the PyTorch code."""
    B_, nv, _ = bags.shape
    # bags.unfold(-1, patch_len, stride) -> (B, nvars, patch_num, patch_len)
    patches = jnp.stack(
        [bags[:, :, i * STRIDE:i * STRIDE + PATCH_LEN] for i in range(PATCH_NUM)],
        axis=2)
    # mean_norm: x.mean(axis=2).mean(axis=-1) -> (B, nvars, 1, 1)
    x_mean = patches.mean(axis=2).mean(axis=-1)[:, :, None, None]
    patches = patches - x_mean
    # x.transpose(1,2).view(B, patch_num, nvars*patch_len)
    xp = patches.transpose(0, 2, 1, 3).reshape(B_, PATCH_NUM, nv * PATCH_LEN)
    return xp.astype(jnp.float32)


def build_slab(xp):
    """Host-side neighbour-window slab [x_prev | x | x_next], bag-padded to 8 rows."""
    nb, P, F = xp.shape
    zero = jnp.zeros((nb, 1, F), xp.dtype)
    x_prev = jnp.concatenate([zero, xp[:, :P - 1, :]], axis=1)   # conv zero-pad at p=0
    x_next = jnp.concatenate([xp[:, 1:, :], zero], axis=1)       # conv zero-pad at p=P-1
    slab = jnp.concatenate([x_prev, xp, x_next], axis=-1)        # (nb, P, 3F)
    slab = jnp.pad(slab, ((0, 0), (0, P_PAD - P), (0, 0)))       # pad rows -> 0
    return slab.reshape(nb * P_PAD, 3 * F)


def millet_forward(bags, folded):
    xp = preprocess(bags)                                  # (B, P, F)
    nb = xp.shape[0]
    slab = build_slab(xp)                                  # (B*P_PAD, 3F)
    bp = nb * P_PAD

    vmem = pl.BlockSpec(memory_space=pltpu.MemorySpace.VMEM)   # whole-array VMEM blocks
    flops = (2 * bp * (3 * FEAT) * D_MODEL
             + 2 * bp * D_MODEL * HEADW
             + 2 * nb * bp * HEADW)
    bytes_accessed = 4 * (slab.size + folded["w_eff"].size + folded["bias"].size
                          + folded["w_head"].size + folded["b_head"].size
                          + folded["sel"].size + folded["b_cls"].size + nb * N_CLASSES)

    return pl.pallas_call(
        millet_kernel,
        out_shape=jax.ShapeDtypeStruct((nb, N_CLASSES), jnp.float32),
        in_specs=[vmem] * 7,
        out_specs=vmem,
        cost_estimate=pl.CostEstimate(flops=flops,
                                      transcendentals=bp + nb,
                                      bytes_accessed=bytes_accessed),
    )(slab, folded["w_eff"], folded["bias"], folded["w_head"], folded["b_head"],
      folded["sel"], folded["b_cls"])


def millet_reference(bags, params):
    """Pure-JAX reference of the unfolded forward pass (checks the folding is exact)."""
    xp = preprocess(bags)                                            # (B, P, F)
    z = xp @ params["W_P"] + params["b_P"] + params["W_pos"]         # (B, P, patch_dim)
    zpad = jnp.pad(z, ((0, 0), (1, 1), (0, 0)))
    h = params["b_conv"]
    for k in range(KSIZE):
        h = h + jnp.einsum("bpd,de->bpe", zpad[:, k:k + PATCH_NUM, :], params["W_conv"][k])
    h = jnp.maximum(h, 0.0)                                          # (B, P, d_model)
    a = jax.nn.softmax(h @ params["w_attn"], axis=1)                 # (B, P, 1)
    inst = h @ params["W_cls"] + params["b_cls"]                     # (B, P, C)
    return jnp.sum(a * inst, axis=1)                                 # (B, C)


if __name__ == "__main__":
    key = jax.random.PRNGKey(0)
    k_bags, k_params = jax.random.split(key)
    bags = jax.random.normal(k_bags, (B, NVARS, SAMPLE_LEN), jnp.float32)
    params = init_params(k_params)

    # Folding hoisted out of the per-call jit path (computed once at model load).
    folded = jax.tree_util.tree_map(jax.block_until_ready, prepare_folded(params, B))

    fwd = jax.jit(millet_forward)
    out = jax.block_until_ready(fwd(bags, folded))

    ref = millet_reference(bags, params)
    assert out.shape == (B, N_CLASSES)
    assert jnp.allclose(out, ref, atol=2e-2, rtol=2e-2), (out, ref)
    # TODO(synk): recon / encoder / feat_selcl branches (decoder, Sel_CL head,
    # sample_embeddings) are not exercised by the default forward path and are
    # omitted.
    print("KERNEL_OK")
</pallas_src>

<mosaic_0001>
module attributes {stable_mosaic.version = 11 : i64} {
  func.func @millet_kernel(%arg0: memref<16x96xf32, #tpu.memory_space<vmem>>, %arg1: memref<96x32xf32, #tpu.memory_space<vmem>>, %arg2: memref<16x32xf32, #tpu.memory_space<vmem>>, %arg3: memref<32x8xf32, #tpu.memory_space<vmem>>, %arg4: memref<1x8xf32, #tpu.memory_space<vmem>>, %arg5: memref<2x16xf32, #tpu.memory_space<vmem>>, %arg6: memref<1x4xf32, #tpu.memory_space<vmem>>, %arg7: memref<2x4xf32, #tpu.memory_space<vmem>>) attributes {dimension_semantics = [], scalar_prefetch = 0 : i64, scratch_operands = 0 : i64, tpu.core_type = #tpu.core_type<tc>} {
    %c0 = arith.constant 0 : index
    %c0_0 = arith.constant 0 : index
    %0 = vector.load %arg0[%c0, %c0_0] : memref<16x96xf32, #tpu.memory_space<vmem>>, vector<16x96xf32>
    %c0_1 = arith.constant 0 : index
    %c0_2 = arith.constant 0 : index
    %1 = vector.load %arg1[%c0_1, %c0_2] : memref<96x32xf32, #tpu.memory_space<vmem>>, vector<96x32xf32>
    %cst = arith.constant dense<0.000000e+00> : vector<16x32xf32>
    %2 = tpu.matmul %0, %1, %cst {dimension_numbers = #tpu.dot_dimension_numbers<[1], [0], [0], [1], [0, 0, 1, 1], [], []>} : vector<16x96xf32>, vector<96x32xf32>, vector<16x32xf32> -> vector<16x32xf32>
    %c0_3 = arith.constant 0 : index
    %c0_4 = arith.constant 0 : index
    %3 = vector.load %arg2[%c0_3, %c0_4] : memref<16x32xf32, #tpu.memory_space<vmem>>, vector<16x32xf32>
    %4 = arith.addf %2, %3 : vector<16x32xf32>
    %cst_5 = arith.constant 0.000000e+00 : f32
    %5 = vector.broadcast %cst_5 : f32 to vector<16x32xf32>
    %6 = arith.maximumf %4, %5 : vector<16x32xf32>
    %c0_6 = arith.constant 0 : index
    %c0_7 = arith.constant 0 : index
    %7 = vector.load %arg3[%c0_6, %c0_7] : memref<32x8xf32, #tpu.memory_space<vmem>>, vector<32x8xf32>
    %cst_8 = arith.constant dense<0.000000e+00> : vector<16x8xf32>
    %8 = tpu.matmul %6, %7, %cst_8 {dimension_numbers = #tpu.dot_dimension_numbers<[1], [0], [0], [1], [0, 0, 1, 1], [], []>} : vector<16x32xf32>, vector<32x8xf32>, vector<16x8xf32> -> vector<16x8xf32>
    %c0_9 = arith.constant 0 : index
    %c0_10 = arith.constant 0 : index
    %9 = vector.load %arg4[%c0_9, %c0_10] : memref<1x8xf32, #tpu.memory_space<vmem>>, vector<1x8xf32>
    %10 = vector.broadcast %9 : vector<1x8xf32> to vector<16x8xf32>
    %11 = arith.addf %8, %10 : vector<16x8xf32>
    %12 = vector.extract_strided_slice %11 {offsets = [0, 0], sizes = [16, 1], strides = [1, 1]} : vector<16x8xf32> to vector<16x1xf32>
    %cst_11 = arith.constant dense<0xFF800000> : vector<1xf32>
    %13 = vector.multi_reduction <maximumf>, %12, %cst_11 [0] : vector<16x1xf32> to vector<1xf32>
    %14 = vector.shape_cast %13 : vector<1xf32> to vector<1x1xf32>
    %15 = vector.broadcast %14 : vector<1x1xf32> to vector<16x1xf32>
    %16 = arith.subf %12, %15 : vector<16x1xf32>
    %17 = math.exp %16 : vector<16x1xf32>
    %c0_12 = arith.constant 0 : index
    %c0_13 = arith.constant 0 : index
    %18 = vector.load %arg5[%c0_12, %c0_13] : memref<2x16xf32, #tpu.memory_space<vmem>>, vector<2x16xf32>
    %19 = vector.broadcast %17 : vector<16x1xf32> to vector<16x8xf32>
    %20 = arith.mulf %19, %11 : vector<16x8xf32>
    %cst_14 = arith.constant dense<0.000000e+00> : vector<2x8xf32>
    %21 = tpu.matmul %18, %20, %cst_14 {dimension_numbers = #tpu.dot_dimension_numbers<[1], [0], [0], [1], [0, 0, 1, 1], [], []>} : vector<2x16xf32>, vector<16x8xf32>, vector<2x8xf32> -> vector<2x8xf32>
    %22 = vector.extract_strided_slice %21 {offsets = [0, 1], sizes = [2, 1], strides = [1, 1]} : vector<2x8xf32> to vector<2x1xf32>
    %23 = vector.extract_strided_slice %21 {offsets = [0, 2], sizes = [2, 4], strides = [1, 1]} : vector<2x8xf32> to vector<2x4xf32>
    %24 = tpu.reciprocal %22 {approx = true} : vector<2x1xf32> -> vector<2x1xf32>
    %25 = vector.broadcast %24 : vector<2x1xf32> to vector<2x4xf32>
    %26 = arith.mulf %23, %25 : vector<2x4xf32>
    %c0_15 = arith.constant 0 : index
    %c0_16 = arith.constant 0 : index
    %27 = vector.load %arg6[%c0_15, %c0_16] : memref<1x4xf32, #tpu.memory_space<vmem>>, vector<1x4xf32>
    %28 = vector.broadcast %27 : vector<1x4xf32> to vector<2x4xf32>
    %29 = arith.addf %26, %28 : vector<2x4xf32>
    %c0_17 = arith.constant 0 : index
    %c0_18 = arith.constant 0 : index
    %30 = vector.load %arg7[%c0_17, %c0_18] : memref<2x4xf32, #tpu.memory_space<vmem>>, vector<2x4xf32>
    tpu.vector_store %arg7[%c0_17, %c0_18], %29 {strides = array<i32>} : memref<2x4xf32, #tpu.memory_space<vmem>>, vector<2x4xf32>,
    return
  }
}

</mosaic_0001>

<bundles_post_ra>
// kernel: millet_forward.1
= control target key start
LH: loop header
LB: loop body
LE: loop exit
PB: predicated region body
PF: predicated region fallthrough
CT: control target
= control target key end

     0   :  { %vm43_vm0 = vcmask 785408   ;;  %s642_s0 = inlined_call_operand.vmem [shape: f32[16,96], index: 0, kind: input, shape index: {}]   ;;  %s643_s1 = inlined_call_operand.vmem [shape: f32[96,32], index: 1, kind: input, shape index: {}]   ;;  %s644_s2 = inlined_call_operand.vmem [shape: f32[16,32], index: 2, kind: input, shape index: {}]   ;;  %s645_s3 = inlined_call_operand.vmem [shape: f32[32,8], index: 3, kind: input, shape index: {}]   ;;  %s646_s4 = inlined_call_operand.vmem [shape: f32[1,8], index: 4, kind: input, shape index: {}]   ;;  %s647_s5 = inlined_call_operand.vmem [shape: f32[2,16], index: 5, kind: input, shape index: {}]   ;;  %s648_s6 = inlined_call_operand.vmem [shape: f32[1,4], index: 6, kind: input, shape index: {}]   ;;  %s649_s7 = inlined_call_operand.hbm [shape: f32[2,4], index: 7, kind: output, shape index: {}]  }
   0x1   :  { %v29_v0 = vld [vmem:[%s643_s1] sm:$0xff]  ;;  %v30_v1 = vld [vmem:[%s643_s1 + $0x8] sm:$0xff]  ;;  %v31_v2 = vld [vmem:[%s643_s1 + $0x10] sm:$0xff] }
   0x2   :  { %v435_v3 = vpack.c.bf16 %v30_v1, %v29_v0  ;;  %v32_v4 = vld [vmem:[%s643_s1 + $0x18] sm:$0xff]  ;;  %v33_v6 = vld [vmem:[%s643_s1 + $0x20] sm:$0xff]  ;;  %v34_v7 = vld [vmem:[%s643_s1 + $0x28] sm:$0xff] }
   0x3   :  { %v439_v5 = vpack.c.bf16 %v32_v4, %v31_v2  ;;  %v27_v8 = vld [vmem:[%s642_s0] sm:$0xff]  ;;  %v443_v10 = vpack.c.bf16 %v34_v7, %v33_v6  ;;  %v128_v11 = vld [vmem:[%s645_s3 + $0x8] sm:$0xff] }
   0x4   :  { %436 = vmatprep.subr.bf16.mxu0 %v435_v3  ;;  %v127_v9 = vld [vmem:[%s645_s3] sm:$0xff]  ;;  %414 = vmatprep.mubr.msk.f32.mxu0 %vm43_vm0, %v27_v8 }
   0x5   :  { %438 = vmatpush3.bf16.msra.mxu0 %v435_v3 }
   0x6   :  { %440 = vmatprep.subr.bf16.mxu0 %v439_v5 }
   0x7   :  { %12 = vsyncpa [#allocation3], 0  ;;  %v35_v12 = vld [vmem:[%s643_s1 + $0x30] sm:$0xff]  ;;  %v36_v13 = vld [vmem:[%s643_s1 + $0x38] sm:$0xff]  ;;  %v459_v14 = vpack.c.bf16 %v128_v11, %v127_v9  ;;  %vm138_vm1 = vcmask 261120   ;;  %v511_v34 = vmov 0  }
   0x8   :  { %v447_v15 = vpack.c.bf16 %v36_v13, %v35_v12  ;;  %v37_v16 = vld [vmem:[%s643_s1 + $0x40] sm:$0xff]  ;;  %v38_v17 = vld [vmem:[%s643_s1 + $0x48] sm:$0xff]  ;;  %v39_v19 = vld [vmem:[%s643_s1 + $0x50] sm:$0xff]  ;;  %478 = vset.pattern.permute.xlu0 %v511_v34  ;;  %vm220_vm2 = vcmask 7168   ;;  %v512_v55 = vmov 0.0|0.0   ;;  %vm513_vm3 = vmmov 0  }
   0x9   :  { %442 = vmatpush3.bf16.msra.mxu0 %v439_v5  ;;  %460 = vmatprep.subr.bf16.mxu1 %v459_v14  ;;  %v451_v18 = vpack.c.bf16 %v38_v17, %v37_v16  ;;  %v40_v20 = vld [vmem:[%s643_s1 + $0x58] sm:$0xff]  ;;  %v28_v22 = vld [vmem:[%s642_s0 + $0x8] sm:$0xff]  ;;  %v129_v23 = vld [vmem:[%s645_s3 + $0x10] sm:$0xff]  ;;  %v514_v56 = vmov 0.0   ;;  %vm249_vm4 = vcmask 130048   ;;  %v515_v63 = vmov 1  }
   0xa   :  { %444 = vmatprep.subr.bf16.mxu0 %v443_v10  ;;  %462 = vmatpush3.bf16.msra.mxu1 %v459_v14  ;;  %v455_v21 = vpack.c.bf16 %v40_v20, %v39_v19  ;;  %v130_v24 = vld [vmem:[%s645_s3 + $0x18] sm:$0xff]  ;;  %v42_v26 = vld [vmem:[%s644_s2 + $0x8] sm:$0xff]  ;;  %v41_v27 = vld [vmem:[%s644_s2] sm:$0xff]  ;;  %s516_s19 = smov 2   ;;  %s518_s20 = smov [#allocation2]   ;;  %vm344_vm5 = vcmask 25600  }
   0xb   :  { %v463_v25 = vpack.c.bf16 %v130_v24, %v129_v23  ;;  %v362_v35 = vld [vmem:[%s646_s4] ss:$0 sm:$0xff]  ;;  %479 = vset.pattern.permute.xlu1 %v515_v63  ;;  %s352_s21 = sshll.u32 %s518_s20, 4  ;;  %s353_s21 = int_to_ptr.vmem [resolvable:$true] %s352_s21 }
   0xc   :  { %v236_v62 = vld [vmem:[%s647_s5] sm:$0x3]  ;;  %s517_s5 = smov 126   ;;  %s487_s22 = scalar_lea.vmem %s353_s21, 32 }
   0xd   :  { %446 = vmatpush3.bf16.msra.mxu0 %v443_v10  ;;  %464 = vmatprep.subr.bf16.mxu1 %v463_v25  ;;  %v366_v3 = vld [vmem:[%s648_s6] ss:$0 sm:$0xff]  ;;  %p488_p0 = scmp.ne.s32.totalorder %s353_s21, %s487_s22  ;;  %p492_p1 = scmp.lt.s32.totalorder %s353_s21, %s353_s21 }
   0xe   :  { %448 = vmatprep.subr.bf16.mxu0 %v447_v15  ;;  %466 = vmatpush3.bf16.msra.mxu1 %v463_v25  ;;  %p493_p2 = scmp.lt.s32.totalorder %s487_s22, %s487_s22 }
   0xf   :  { %467 = vmatprep.subr.bf16.mxu1 %v512_v55 }
  0x10   :  { %p494_p3 = por %p493_p2, %p492_p1 }
  0x11   :  { %450 = vmatpush3.bf16.msra.mxu0 %v447_v15 }
  0x12   :  { %452 = vmatprep.subr.bf16.mxu0 %v451_v18  ;;  %p495_p4 = pnand %p494_p3, %p488_p0 }
  0x15   :  { %454 = vmatpush3.bf16.msra.mxu0 %v451_v18 }
  0x16   :  { %456 = vmatprep.subr.bf16.mxu0 %v455_v21 }
  0x19   :  { %458 = vmatpush3.bf16.msra.mxu0 %v455_v21 }
  0x1c   :  { %415 = vmatmul.mubr.msk.f32.vlgmr.msra.gmra.mrb[0].mxu0 %vm43_vm0, %v28_v22 }
  0xef   :  { %v416_v28 = vpop.f32.mrb[0].mxu0 }
  0xf0   :  { %v122_v29 = vadd.f32 %v416_v28, %v42_v26  ;;  %v116_v30 = vpop.f32.mrb[1].mxu0 }
  0xf1   :  { %v117_v31 = vadd.f32 %v116_v30, %v41_v27 }
  0xf2   :  { %v126_v33 = vmax.f32 %v122_v29, 0.0 }
  0xf3   :  { %v125_v32 = vmax.f32 %v117_v31, 0.0 }
  0xf5   :  { %425 = vmatprep.mubr.msk.f32.mxu1 %vm138_vm1, %v125_v32 }
  0xf6   :  { %426 = vmatmul.mubr.msk.f32.vlgmr.msra.gmra.mrb[0].mxu1 %vm138_vm1, %v126_v33 }
  0xf7   :  { %432 = vmatprep.mubr.msk.f32.mxu1 %vm513_vm3, %v514_v56 }
 0x1c9   :  { %v427_v36 = vpop.f32.mrb[0].mxu1 }
 0x1ca   :  { %v217_v37 = vadd.f32 %v427_v36, %v362_v35  ;;  %v211_v38 = vpop.f32.mrb[1].mxu1 }
 0x1cb   :  { %v212_v39 = vadd.f32 %v362_v35, %v211_v38 }
 0x1cc   :  { %v222_v40 = vsel %vm220_vm2, %v217_v37, -inf }
 0x1cd   :  { %v221_v41 = vsel %vm220_vm2, %v212_v39, -inf }
 0x1ce   :  { %v223_v42 = vmax.f32 %v221_v41, %v222_v40 }
 0x1d0   :  { %v224_v43 = vrot.slane %v223_v42, 4 }
 0x1d2   :  { %v225_v44 = vmax.f32 %v223_v42, %v224_v43 }
 0x1d4   :  { %v226_v45 = vrot.slane %v225_v44, 2 }
 0x1d6   :  { %v227_v46 = vmax.f32 %v225_v44, %v226_v45 }
 0x1d8   :  { %v228_v47 = vrot.slane %v227_v46, 1 }
 0x1da   :  { %v229_v48 = vmax.f32 %v227_v46, %v228_v47 }
 0x1dc   :  { %v230_v49 = vsub.f32 %v212_v39, %v229_v48  ;;  %v231_v50 = vsub.f32 %v217_v37, %v229_v48 }
 0x1de   :  { %v232_v51 = vmul.f32 1.442695, %v230_v49  ;;  %v234_v52 = vmul.f32 1.442695, %v231_v50 }
 0x1e0   :  { %481 = vpow2.f32 %v232_v51 }
 0x1e1   :  { %483 = vpow2.f32 %v234_v52 }
 0x1ea   :  { %v482_v53 = vpop.eup %481 }
 0x1eb   :  { %239 = vperm.xlu0 %478, %v482_v53   ;;  %v484_v54 = vpop.eup %483 }
 0x1ef   :  { %244 = vperm.xlu0 %478, %v484_v54  }
 0x1f3   :  { %480 = vset.pattern.permute.xlu0 %v515_v63 }
 0x26a   :  { %v240_v57 = vpop.permute.xlu0 %239 }
 0x26b   :  { %v247_v59 = vmul.f32 %v240_v57, %v212_v39 }
 0x26e   :  { %v245_v58 = vpop.permute.xlu0 %244 }
 0x26f   :  { %v248_v60 = vmul.f32 %v245_v58, %v217_v37 }
 0x271   :  { %v468_v61 = vpack.c.bf16 %v248_v60, %v247_v59 }
 0x273   :  { %469 = vmatpush3.bf16.msra.mxu1 %v468_v61 }
 0x276   :  { %433 = vmatmul.mubr.msk.f32.vlgmr.msra.gmra.mrb[2].mxu1 %vm249_vm4, %v236_v62 }
 0x349   :  { %v319_v0 = vpop.f32.mrb[2].mxu1 }
 0x34a   :  { %485 = vrcp.f32 %v319_v0  ;;  %v434_v1 = vpop.f32.mrb[3].mxu1 }
 0x354   :  { %v486_v2 = vpop.eup %485 }
 0x355   :  { %326 = vperm.xlu1 %479, %v486_v2  }
 0x359   :  { %336 = vrot.lane.b32.xlu1 %v366_v3, %s516_s19 }
 0x3d4   :  { %v327_v4 = vpop.permute.xlu1 %326 }
 0x3d5   :  { %v329_v5 = vmul.f32 %v327_v4, %v319_v0 }
 0x3d8   :  { %v337_v6 = vpop.permute.xlu1 %336 }
 0x3d9   :  { %v339_v7 = vadd.f32 %v337_v6, %v329_v5 }
 0x3db   :  { %341 = vrot.lane.b32.xlu0 %v339_v7, %s517_s5 }
 0x44d   :  { %v342_v8 = vpop.permute.xlu0 %341 }
 0x44e   :  { %345 = vst.msk [vmem:[#allocation2] sm:$0x3] %vm344_vm5, %v342_v8 }
 0x44f   :  { %498 = shalt.err (!%p495_p4)
}
 0x450   :  { %s499_s24 = scalar_lea.hbm %s649_s7, 32 }
 0x451   :  { %p500_p5 = scmp.ne.s32.totalorder %s649_s7, %s499_s24  ;;  %p503_p6 = scmp.lt.u32.totalorder %s499_s24, %s649_s7 }
 0x453   :  { %p505_p7 = pnand %p503_p6, %p500_p5 }
 0x455   :  { %508 = shalt.err (!%p505_p7)
}
 0x456   :  { %355 = dma.vmem_to_hbm [thread:$0]  %s353_s21, 32, %s649_s7, [#allocation3]  }
 0x457   :  { %509 = dma.done.wait [#allocation3], 32  }
 0x458   :  { %510 = vsyncadd [#allocation3], 4294967264 }
 0x459   :  { %359 = vsyncpa [#allocation3], 1 }

</bundles_post_ra>
